<compile_context>
chip_gen: v7x
topology: tpu7x:2x2x1
jax: 0.10.0
libtpu: 0.0.40
codegen_flags: <defaults>
</compile_context>

<pallas_src>
import jax
import jax.numpy as jnp
from jax.experimental import pallas as pl
from jax.experimental.pallas import tpu as pltpu


def _round_up(x: int, m: int) -> int:
    return (x + m - 1) // m * m


def tiny_model_kernel(x_ref, w_ref, b_ref, out_ref):
    """out = x @ W_eff + b_eff  (single MXU matmul, f32 accumulation).

    x_ref  : (bt, NK)      bf16 — flattened input batch tile (streamed over batch)
    w_ref  : (NK, O_pad)   bf16 — folded effective weight (W1 folded through W2), resident
    b_ref  : (1, O_pad)    f32  — folded effective bias, resident
    out_ref: (bt, O_pad)   bf16 — lane-dense padded output tile
    """
    acc = jnp.dot(x_ref[...], w_ref[...], preferred_element_type=jnp.float32)
    out_ref[...] = (acc + b_ref[...]).astype(out_ref.dtype)


def fold_tiny_model_params(w1, b1, w2, b2, n_tokens, *,
                           stream_dtype=jnp.bfloat16, lane_pad=128):
    """One-time algebraic fold of the two Linears (no nonlinearity between them).

    out = flatten(x @ W1^T + b1) @ W2^T + b2 = x_flat @ W_eff + b_eff, with
    W_eff[n*K+k, :] = sum_h W1[h,k] * W2^T[n*H+h, :]   and
    b_eff = b1 @ sum_n(W2_blocks[n]) + b2.

    Must be re-run whenever w1/b1/w2/b2 change (it is hoisted out of the forward path).
    Returns (w_eff[NK, O_pad] stream_dtype, b_eff[1, O_pad] f32, O).
    """
    H, K = w1.shape
    O = w2.shape[0]
    w2_blocks = w2.T.reshape(n_tokens, H, O)          # (N*H, O) -> (N, H, O); row-major Flatten
    w_eff = jnp.einsum("kh,nho->nko", w1.T, w2_blocks,
                       preferred_element_type=jnp.float32).reshape(n_tokens * K, O)
    b_eff = b1 @ w2_blocks.sum(axis=0) + b2           # (O,)

    # Lane-dense output: pad O up to a multiple of 128 with zero columns (sliced off after the call).
    O_pad = max(lane_pad, _round_up(O, lane_pad))
    w_eff = jnp.pad(w_eff, ((0, 0), (0, O_pad - O))).astype(stream_dtype)
    b_eff = jnp.pad(b_eff, (0, O_pad - O)).reshape(1, O_pad).astype(jnp.float32)
    return w_eff, b_eff, O


def tiny_model_forward(x, w_eff, b_eff, out_features, *,
                       out_dtype=jnp.bfloat16,
                       force_pallas=False,
                       small_batch_threshold=64,
                       max_batch_tile=2048):
    """Forward pass.  x: (B, N, K).  w_eff/b_eff from fold_tiny_model_params.  Returns (B, O)."""
    B = x.shape[0]
    NK, O_pad = w_eff.shape
    x_flat = x.reshape(B, NK).astype(w_eff.dtype)     # row-major flatten matches W_eff layout

    # Small-batch fallback: custom-call dispatch + one grid step dwarfs the ~6 kFLOP of work;
    # XLA's fused dot is strictly faster here.
    if B < small_batch_threshold and not force_pallas:
        out = jnp.dot(x_flat, w_eff, preferred_element_type=jnp.float32) + b_eff
        return out[:, :out_features].astype(out_dtype)

    # Batch tile: big enough to amortize the ~0.35 us/step pipeline overhead, capped so the
    # "parallel" batch axis always yields >= 2 tiles (keeps both v7x TensorCores busy; the cap is
    # a no-op cost on single-TC v5e/v6e).  bt=2048 double-buffered is ~2.4 MiB of VMEM — trivial.
    if B <= 8:
        bt = B
    else:
        bt = min(max_batch_tile, _round_up(pl.cdiv(B, 2), 8))
    grid = (pl.cdiv(B, bt),)

    # NOTE: when B % bt != 0 the last block extends past the array; this is safe only because the
    # computation is row-independent with no cross-step accumulation (OOB writes are masked).
    out_padded = pl.pallas_call(
        tiny_model_kernel,
        out_shape=jax.ShapeDtypeStruct((B, O_pad), out_dtype),
        grid_spec=pltpu.PrefetchScalarGridSpec(
            num_scalar_prefetch=0,
            grid=grid,
            in_specs=[
                pl.BlockSpec((bt, NK), lambda i: (i, 0)),      # x tile, streamed over batch
                pl.BlockSpec((NK, O_pad), lambda i: (0, 0)),   # folded weight, resident
                pl.BlockSpec((1, O_pad), lambda i: (0, 0)),    # folded bias, resident
            ],
            out_specs=pl.BlockSpec((bt, O_pad), lambda i: (i, 0)),
        ),
        compiler_params=pltpu.CompilerParams(
            dimension_semantics=("parallel",),                  # v7x: shard batch tiles across TCs
        ),
    )(x_flat, w_eff, b_eff)

    return out_padded[:, :out_features]


if __name__ == "__main__":
    # Small shapes consistent with the forward: x is (B, N, 3) so the Flatten is meaningful.
    B, N, K, H, O = 2, 8, 3, 1024, 10

    key = jax.random.PRNGKey(0)
    kx, kw1, kb1, kw2, kb2 = jax.random.split(key, 5)

    x = jax.random.normal(kx, (B, N, K), dtype=jnp.float32)

    # Deterministic parameter init (PyTorch Linear weight shape is [out, in]).
    w1 = jax.random.normal(kw1, (H, K), dtype=jnp.float32) * 0.1       # Linear(3 -> 1024)
    b1 = jax.random.normal(kb1, (H,), dtype=jnp.float32) * 0.1
    w2 = jax.random.normal(kw2, (O, N * H), dtype=jnp.float32) * 0.01  # Linear(N*H -> O)
    b2 = jax.random.normal(kb2, (O,), dtype=jnp.float32) * 0.1

    # ---- One-time fold, hoisted out of the per-call path (re-run only if w1/b1/w2/b2 change). ----
    w_eff, b_eff, out_features = fold_tiny_model_params(w1, b1, w2, b2, N)
    w_eff, b_eff = jax.block_until_ready((w_eff, b_eff))

    # Fold correctness check (f32 fold vs. the unfused two-Linear pipeline).
    w_eff32, b_eff32, _ = fold_tiny_model_params(w1, b1, w2, b2, N, stream_dtype=jnp.float32)
    x_flat = x.reshape(B, N * K)
    full_ref = (x @ w1.T + b1).reshape(B, N * H) @ w2.T + b2
    fold_ref = x_flat @ w_eff32[:, :O] + b_eff32[:, :O]
    assert jnp.allclose(fold_ref, full_ref, atol=1e-3, rtol=1e-3), (
        f"fold mismatch: max abs err {jnp.max(jnp.abs(fold_ref - full_ref))}")

    # ---- Run the Pallas kernel at the tiny test batch (forced past the small-batch fallback). ----
    out = tiny_model_forward(x, w_eff, b_eff, out_features, force_pallas=True)
    out = jax.block_until_ready(out)
    assert out.shape == (B, O)

    # Reference built from the same bf16-quantized streams (isolates kernel error from quantization).
    wq = w_eff.astype(jnp.float32)[:, :O]
    xq = x_flat.astype(jnp.bfloat16).astype(jnp.float32)
    ref_q = xq @ wq + b_eff[:, :O]
    err = jnp.max(jnp.abs(out.astype(jnp.float32) - ref_q))
    assert jnp.allclose(out.astype(jnp.float32), ref_q, atol=2e-2, rtol=2e-2), (
        f"kernel mismatch: max abs err {err}")

    # ---- Also exercise the multi-tile (grid >= 2) path the kernel is actually designed for. ----
    B2 = 128
    x2 = jax.random.normal(jax.random.PRNGKey(1), (B2, N, K), dtype=jnp.float32)
    out2 = jax.block_until_ready(tiny_model_forward(x2, w_eff, b_eff, out_features))
    x2q = x2.reshape(B2, N * K).astype(jnp.bfloat16).astype(jnp.float32)
    ref2 = x2q @ wq + b_eff[:, :O]
    assert out2.shape == (B2, O)
    assert jnp.allclose(out2.astype(jnp.float32), ref2, atol=2e-2, rtol=2e-2), (
        f"tiled kernel mismatch: max abs err {jnp.max(jnp.abs(out2.astype(jnp.float32) - ref2))}")

    # Small-batch auto dispatch (plain jnp fallback) sanity check.
    out_small = jax.block_until_ready(tiny_model_forward(x, w_eff, b_eff, out_features))
    assert jnp.allclose(out_small.astype(jnp.float32), ref_q, atol=2e-2, rtol=2e-2)

    print("KERNEL_OK")
</pallas_src>

<mosaic_0001>
module attributes {stable_mosaic.version = 11 : i64} {
  func.func @tiny_model_kernel(%arg0: i32, %arg1: memref<2x24xbf16, #tpu.memory_space<vmem>>, %arg2: memref<24x128xbf16, #tpu.memory_space<vmem>>, %arg3: memref<1x128xf32, #tpu.memory_space<vmem>>, %arg4: memref<2x128xbf16, #tpu.memory_space<vmem>>) attributes {dimension_semantics = [#tpu.dimension_semantics<parallel>], iteration_bounds = array<i64: 1>, scalar_prefetch = 0 : i64, scratch_operands = 0 : i64, tpu.core_type = #tpu.core_type<tc>, window_params = [{transform_indices = @transform_0, window_bounds = array<i64: 2, 24>}, {pipeline_mode = #tpu.pipeline_mode<synchronous>, transform_indices = @transform_1, window_bounds = array<i64: 24, 128>}, {pipeline_mode = #tpu.pipeline_mode<synchronous>, transform_indices = @transform_2, window_bounds = array<i64: 1, 128>}, {transform_indices = @transform_3, window_bounds = array<i64: 2, 128>}]} {
    %c0 = arith.constant 0 : index
    %c0_0 = arith.constant 0 : index
    %0 = vector.load %arg1[%c0, %c0_0] : memref<2x24xbf16, #tpu.memory_space<vmem>>, vector<2x24xbf16>
    %c0_1 = arith.constant 0 : index
    %c0_2 = arith.constant 0 : index
    %1 = vector.load %arg2[%c0_1, %c0_2] : memref<24x128xbf16, #tpu.memory_space<vmem>>, vector<24x128xbf16>
    %cst = arith.constant dense<0.000000e+00> : vector<2x128xf32>
    %2 = tpu.matmul %0, %1, %cst {dimension_numbers = #tpu.dot_dimension_numbers<[1], [0], [0], [1], [0, 0, 1, 1], [], []>} : vector<2x24xbf16>, vector<24x128xbf16>, vector<2x128xf32> -> vector<2x128xf32>
    %c0_3 = arith.constant 0 : index
    %c0_4 = arith.constant 0 : index
    %3 = vector.load %arg3[%c0_3, %c0_4] : memref<1x128xf32, #tpu.memory_space<vmem>>, vector<1x128xf32>
    %4 = vector.broadcast %3 : vector<1x128xf32> to vector<2x128xf32>
    %5 = arith.addf %2, %4 : vector<2x128xf32>
    %6 = arith.truncf %5 : vector<2x128xf32> to vector<2x128xbf16>
    %c0_5 = arith.constant 0 : index
    %c0_6 = arith.constant 0 : index
    %7 = vector.load %arg4[%c0_5, %c0_6] : memref<2x128xbf16, #tpu.memory_space<vmem>>, vector<2x128xbf16>
    tpu.vector_store %arg4[%c0_5, %c0_6], %6 {strides = array<i32>} : memref<2x128xbf16, #tpu.memory_space<vmem>>, vector<2x128xbf16>,
    return
  }
  func.func @transform_0(%arg0: i32) -> (i32, i32) {
    %c0_i32 = arith.constant 0 : i32
    %c0_i32_0 = arith.constant 0 : i32
    return %arg0, %c0_i32 : i32, i32
  }
  func.func @transform_1(%arg0: i32) -> (i32, i32) {
    %c0_i32 = arith.constant 0 : i32
    %c0_i32_0 = arith.constant 0 : i32
    %c0_i32_1 = arith.constant 0 : i32
    return %c0_i32, %c0_i32_0 : i32, i32
  }
  func.func @transform_2(%arg0: i32) -> (i32, i32) {
    %c0_i32 = arith.constant 0 : i32
    %c0_i32_0 = arith.constant 0 : i32
    %c0_i32_1 = arith.constant 0 : i32
    return %c0_i32, %c0_i32_0 : i32, i32
  }
  func.func @transform_3(%arg0: i32) -> (i32, i32) {
    %c0_i32 = arith.constant 0 : i32
    %c0_i32_0 = arith.constant 0 : i32
    return %arg0, %c0_i32 : i32, i32
  }
}

</mosaic_0001>

<bundles_post_ra>
// kernel: tpu_custom_call.1
= control target key start
LH: loop header
LB: loop body
LE: loop exit
PB: predicated region body
PF: predicated region fallthrough
CT: control target
= control target key end

     0   :  { %8 = vsyncpa [#allocation3], 0  ;;  %s297_s0 = inlined_call_operand.hbm [shape: bf16[2,24], index: 0, kind: input, shape index: {}]   ;;  %s298_s1 = inlined_call_operand.hbm [shape: bf16[24,128], index: 1, kind: input, shape index: {}]   ;;  %s299_s2 = inlined_call_operand.vmem [shape: f32[1,128], index: 2, kind: input, shape index: {}]   ;;  %s300_s3 = inlined_call_operand.hbm [shape: bf16[2,128], index: 3, kind: output, shape index: {}]  }
   0x1   :  { %9 = vsyncpa [#allocation6], 0 }
   0x2   :  { %10 = vsyncpa [#allocation4], 0  ;;  %s224_s12 = smov [#allocation2]   ;;  %s225_s14 = smov [#allocation5]  }
   0x3   :  { %s17_s13 = sshll.u32 %s224_s12, 4  ;;  %s26_s15 = sshll.u32 %s225_s14, 4  ;;  %s18_s13 = int_to_ptr.vmem [resolvable:$true] %s17_s13  ;;  %s251_s15 = int_to_ptr.vmem [resolvable:$true] %s26_s15 }
   0x4   :  { %s152_s18 = scalar_lea.hbm %s297_s0, 16 }
   0x5   :  { %p153_p0 = scmp.ne.s32.totalorder %s297_s0, %s152_s18  ;;  %p156_p1 = scmp.lt.u32.totalorder %s152_s18, %s297_s0 }
   0x7   :  { %p158_p2 = pnand %p156_p1, %p153_p0 }
   0x9   :  { %161 = shalt.err (!%p158_p2)
}
   0xa   :  { %s162_s23 = scalar_lea.vmem %s18_s13, 16  ;;  %s166_s24 = scalar_lea.vmem %s18_s13, 32 }
   0xb   :  { %p163_p3 = scmp.ne.s32.totalorder %s18_s13, %s162_s23  ;;  %p167_p4 = scmp.lt.s32.totalorder %s18_s13, %s18_s13 }
   0xc   :  { %p168_p5 = scmp.lt.s32.totalorder %s166_s24, %s162_s23 }
   0xe   :  { %p169_p6 = por %p168_p5, %p167_p4 }
  0x10   :  { %p170_p7 = pnand %p169_p6, %p163_p3 }
  0x12   :  { %173 = shalt.err (!%p170_p7)
}
  0x13   :  { %20 = dma.hbm_to_vmem [thread:$0]  %s297_s0, 16, %s18_s13, [#allocation3]  }
  0x14   :  { %s174_s29 = scalar_lea.hbm %s298_s1, 192 }
  0x15   :  { %p175_p8 = scmp.ne.s32.totalorder %s298_s1, %s174_s29  ;;  %p178_p9 = scmp.lt.u32.totalorder %s174_s29, %s298_s1 }
  0x17   :  { %p180_p10 = pnand %p178_p9, %p175_p8 }
  0x19   :  { %183 = shalt.err (!%p180_p10)
}
  0x1a   :  { %s184_s7 = scalar_lea.vmem %s251_s15, 192  ;;  %p189_p12 = scmp.lt.s32.totalorder %s251_s15, %s251_s15 }
  0x1b   :  { %p185_p11 = scmp.ne.s32.totalorder %s251_s15, %s184_s7  ;;  %p190_p13 = scmp.lt.s32.totalorder %s184_s7, %s184_s7 }
  0x1d   :  { %p191_p0 = por %p190_p13, %p189_p12 }
  0x1f   :  { %p192_p1 = pnand %p191_p0, %p185_p11 }
  0x21   :  { %195 = shalt.err (!%p192_p1)
}
  0x22   :  { %s226_s0 = smov 64   ;;  %s227_s8 = smov 4  }
  0x23   :  { %32 = dma.hbm_to_vmem [thread:$0]  %s298_s1, 192, %s251_s15, [#allocation6], %s226_s0, %s226_s0, %s227_s8  }
  0x24   :  { %218 = dma.done.wait [#allocation3], 16  }
  0x25   :  { %219 = vsyncadd [#allocation3], 4294967280 }
  0x26   :  { %220 = dma.done.wait [#allocation6], 192  }
  0x27   :  { %221 = vsyncadd [#allocation6], 4294967104  ;;  %v228_v0 = vmov 0.0   ;;  %vm229_vm0 = vmmov 0   ;;  %v150_v1 = vld [vmem:[#allocation5] sm:$0xff]   ;;  %vm66_vm1 = vcmask 1043456  }
  0x28   :  { %135 = vmatprep.subr.bf16.mxu0 %v228_v0  ;;  %139 = vmatprep.mubr.msk.bf16.mxu0 %vm229_vm0, %v228_v0  ;;  %v151_v2 = vld [vmem:[#allocation5 + $0x8] ss:$0 sps:$4 sm:$0xff]   ;;  %v42_v4 = vld [vmem:[#allocation2] sm:$0x1]  ;;  %vm62_vm2 = vcmask 195584   ;;  %s230_s12 = smov [#allocation7]  }
  0x29   :  { %136 = vmatpush3.bf16.msra.mxu0 %v150_v1  ;;  %v68_v3 = vsel %vm66_vm1, %v151_v2, 0  ;;  %v128_v5 = vld [vmem:[%s299_s2] ss:$0 sm:$0xff]  ;;  %s118_s13 = sshll.u32 %s230_s12, 4  ;;  %s119_s13 = int_to_ptr.vmem [resolvable:$true] %s118_s13 }
  0x2a   :  { %137 = vmatprep.subr.bf16.mxu0 %v228_v0  ;;  %s196_s14 = scalar_lea.vmem %s119_s13, 16  ;;  %s200_s15 = scalar_lea.vmem %s119_s13, 32 }
  0x2b   :  { %p197_p2 = scmp.ne.s32.totalorder %s119_s13, %s196_s14  ;;  %p201_p3 = scmp.lt.s32.totalorder %s119_s13, %s119_s13 }
  0x2c   :  { %p202_p4 = scmp.lt.s32.totalorder %s200_s15, %s196_s14 }
  0x2d   :  { %138 = vmatpush3.bf16.msra.mxu0 %v68_v3 }
  0x2e   :  { %p203_p5 = por %p202_p4, %p201_p3 }
  0x30   :  { %140 = vmatmul.mubr.msk.bf16.vlgmr.msra.gmra.mrb[0].mxu0 %vm62_vm2, %v42_v4  ;;  %p204_p6 = pnand %p203_p5, %p197_p2 }
 0x103   :  { %v104_v6 = vpop.f32.mrb[0].mxu0 }
 0x104   :  { %v105_v7 = vadd.f32 %v128_v5, %v104_v6  ;;  %v141_v8 = vpop.f32.mrb[1].mxu0 }
 0x105   :  { %v107_v9 = vpop.f32.mrb[2].mxu0 }
 0x106   :  { %v110_v10 = vpack.c.bf16 %v105_v7, %v105_v7  ;;  %v142_v11 = vpop.f32.mrb[3].mxu0 }
 0x108   :  { %111 = vst [vmem:[#allocation7] sm:$0x1] %v110_v10 }
 0x109   :  { %207 = shalt.err (!%p204_p6)
}
 0x10a   :  { %s208_s17 = scalar_lea.hbm %s300_s3, 16 }
 0x10b   :  { %p209_p7 = scmp.ne.s32.totalorder %s300_s3, %s208_s17  ;;  %p212_p8 = scmp.lt.u32.totalorder %s208_s17, %s300_s3 }
 0x10d   :  { %p214_p9 = pnand %p212_p8, %p209_p7 }
 0x10f   :  { %217 = shalt.err (!%p214_p9)
}
 0x110   :  { %121 = dma.vmem_to_hbm [thread:$0]  %s119_s13, 16, %s300_s3, [#allocation4]  }
 0x111   :  { %222 = dma.done.wait [#allocation4], 16  }
 0x112   :  { %223 = vsyncadd [#allocation4], 4294967280 }
 0x113   :  { %125 = vsyncpa [#allocation3], 1 }
 0x114   :  { %126 = vsyncpa [#allocation6], 1 }
 0x115   :  { %127 = vsyncpa [#allocation4], 1 }

</bundles_post_ra>
